<compile_context>
chip_gen: v7x
topology: tpu7x:2x2x1
jax: 0.10.0
libtpu: 0.0.40
codegen_flags: <defaults>
</compile_context>

<pallas_src>
import math

import jax
import jax.numpy as jnp
from jax.experimental import pallas as pl
from jax.experimental.pallas import tpu as pltpu


def _res_autoencoder_kernel(x_ref, w1_ref, b1_ref, w2_ref, b2_ref, out_ref):
    """One (tile_m, D) batch-tile: encoder Linear -> decoder Linear -> +x."""
    x = x_ref[...].astype(jnp.float32)
    z = jnp.dot(x, w1_ref[...], preferred_element_type=jnp.float32) + b1_ref[...]
    y = jnp.dot(z, w2_ref[...], preferred_element_type=jnp.float32) + b2_ref[...]
    out_ref[...] = (y + x).astype(out_ref.dtype)


def _round_up(a, m):
    return (a + m - 1) // m * m


def _cdiv(a, b):
    return -(-a // b)


def init_params(key, dim, theta, dtype=jnp.float32):
    """PyTorch nn.Linear-style init: U(-1/sqrt(fan_in), 1/sqrt(fan_in)).

    Weights are stored as (in_features, out_features) so the forward computes
    x @ W + b; biases as (1, out_features).
    """
    hid = dim + theta
    layers = [(dim, hid), (hid, dim)]
    params = []
    for fan_in, fan_out in layers:
        key, kw, kb = jax.random.split(key, 3)
        bound = 1.0 / math.sqrt(fan_in)
        w = jax.random.uniform(kw, (fan_in, fan_out), dtype, -bound, bound)
        b = jax.random.uniform(kb, (1, fan_out), dtype, -bound, bound)
        params.append((w, b))
    return params


def prepare_params(params, dim, dtype=jnp.float32):
    """One-time kernel-layout prep (hoisted out of the forward path).

    If 128 % dim == 0, builds block-diagonal weights so `pack = 128 // dim`
    logical rows can share one lane-dense 128-lane row.  Off-diagonal blocks
    are exact zeros (built with .at[].set on a zeros array), so packed rows
    cannot leak into each other.
    """
    (w1, b1), (w2, b2) = params
    hid = w1.shape[1]
    w1 = w1.astype(dtype)
    w2 = w2.astype(dtype)
    b1 = b1.astype(dtype).reshape(1, hid)
    b2 = b2.astype(dtype).reshape(1, dim)

    if dim % 128 == 0:
        pack = 1          # already lane-dense
    elif 128 % dim == 0:
        pack = 128 // dim  # pack rows into one 128-lane row
    else:
        pack = 1          # fallback: natural (unpadded last dim) layout

    if pack == 1:
        return (w1, b1, w2, b2, 1)

    w1_bd = jnp.zeros((pack * dim, pack * hid), dtype)
    w2_bd = jnp.zeros((pack * hid, pack * dim), dtype)
    for p in range(pack):
        w1_bd = w1_bd.at[p * dim:(p + 1) * dim, p * hid:(p + 1) * hid].set(w1)
        w2_bd = w2_bd.at[p * hid:(p + 1) * hid, p * dim:(p + 1) * dim].set(w2)
    b1_bd = jnp.tile(b1, (1, pack))
    b2_bd = jnp.tile(b2, (1, pack))
    return (w1_bd, b1_bd, w2_bd, b2_bd, pack)


def _choose_tiling(M):
    """Pick (tile_m, M_pad): sublane-aligned, low padding waste, even grid."""
    if M <= 16:
        tile = max(8, _round_up(M, 8))
        return tile, _round_up(M, tile)
    target = 1024                      # ~512 KiB f32 block at 128 lanes
    n_steps = max(2, _cdiv(M, target))
    if n_steps % 2:                    # even grid -> both v7x TensorCores busy
        n_steps += 1
    tile = _round_up(_cdiv(M, n_steps), 8)
    return tile, _round_up(M, tile)


def res_autoencoder(x, prepared, dim):
    """Pallas implementation of ResAutoencoder.forward."""
    w1p, b1p, w2p, b2p, pack = prepared

    x2 = x.reshape(-1, dim)
    B = x2.shape[0]
    dtype = x2.dtype
    itemsize = jnp.dtype(dtype).itemsize

    # Free row-major packing: (B, dim) -> (B/pack, pack*dim).
    if pack > 1:
        B_p = _round_up(B, pack)
        if B_p != B:
            x2 = jnp.pad(x2, ((0, B_p - B), (0, 0)))
        xp = x2.reshape(B_p // pack, pack * dim)
    else:
        xp = x2

    M, D = xp.shape
    H = w1p.shape[1]
    tile_m, M_pad = _choose_tiling(M)
    if M_pad != M:
        xp = jnp.pad(xp, ((0, M_pad - M), (0, 0)))
    grid_m = M_pad // tile_m

    # Advisory cost estimate (two matmuls dominate).
    flops = 4 * M_pad * D * H + 3 * M_pad * max(D, H)
    bytes_accessed = int(
        2 * M_pad * D * itemsize                          # x in, out out
        + 4 * (w1p.size + b1p.size + w2p.size + b2p.size))

    # VMEM guard: only raise the scoped limit if the working set needs it
    # (matters on v7x's 64 MiB VMEM once dim/theta scale up).
    vmem_est = (2 * 4 * (w1p.size + b1p.size + w2p.size + b2p.size)
                + 2 * 2 * tile_m * D * itemsize           # x & out, dbl-buffered
                + 4 * tile_m * (H + D))                   # f32 intermediates
    vmem_limit = (min(int(vmem_est * 2), 100 * 1024 * 1024)
                  if vmem_est > 24 * 1024 * 1024 else None)

    out = pl.pallas_call(
        _res_autoencoder_kernel,
        out_shape=jax.ShapeDtypeStruct((M_pad, D), dtype),
        grid_spec=pltpu.PrefetchScalarGridSpec(
            num_scalar_prefetch=0,
            grid=(grid_m,),
            in_specs=[
                pl.BlockSpec((tile_m, D), lambda i: (i, 0)),        # x tile
                pl.BlockSpec(w1p.shape, lambda i: (0, 0)),          # W1 (resident)
                pl.BlockSpec((1, H), lambda i: (0, 0)),             # b1
                pl.BlockSpec(w2p.shape, lambda i: (0, 0)),          # W2 (resident)
                pl.BlockSpec((1, D), lambda i: (0, 0)),             # b2
            ],
            out_specs=pl.BlockSpec((tile_m, D), lambda i: (i, 0)),
        ),
        compiler_params=pltpu.CompilerParams(
            dimension_semantics=("parallel",),
            vmem_limit_bytes=vmem_limit),
        cost_estimate=pl.CostEstimate(
            flops=int(flops), transcendentals=0,
            bytes_accessed=bytes_accessed),
    )(xp, w1p, b1p, w2p, b2p)

    # Strip batch padding and undo the (free) row packing.
    if M_pad != M:
        out = out[:M]
    out = out.reshape(-1, dim)
    if out.shape[0] != B:
        out = out[:B]
    return out


def reference_forward(x, params, dim):
    """Plain-JAX reference (mirrors the PyTorch module exactly)."""
    h = x.reshape(-1, dim).astype(jnp.float32)
    (w1, b1), (w2, b2) = params
    z = h @ w1 + b1
    out = z @ w2 + b2
    out = out + h
    return out.reshape(-1, dim)


if __name__ == "__main__":
    dim, theta = 32, 32            # encoder: 32 -> 64, decoder: 64 -> 32
    key = jax.random.PRNGKey(0)
    k_x, k_p = jax.random.split(key)

    # Arbitrary leading shape; forward flattens to (-1, dim) = (512, 32).
    # With pack=4 the kernel sees a (128, 128) lane-dense slab, tile_m=64,
    # grid=2 (even -> both v7x TensorCores get a tile).
    x = jax.random.normal(k_x, (4, 128, dim), dtype=jnp.float32)
    params = init_params(k_p, dim, theta)
    prepared = prepare_params(params, dim)   # one-time layout prep

    out = res_autoencoder(x, prepared, dim)
    out = jax.block_until_ready(out)

    ref = reference_forward(x, params, dim)
    assert out.shape == (512, dim), out.shape
    assert jnp.allclose(out, ref, atol=1e-5, rtol=1e-5), \
        float(jnp.max(jnp.abs(out - ref)))

    print("KERNEL_OK")
</pallas_src>

<mosaic_0001>
module attributes {stable_mosaic.version = 11 : i64} {
  func.func @_res_autoencoder_kernel(%arg0: i32, %arg1: memref<64x128xf32, #tpu.memory_space<vmem>>, %arg2: memref<128x256xf32, #tpu.memory_space<vmem>>, %arg3: memref<1x256xf32, #tpu.memory_space<vmem>>, %arg4: memref<256x128xf32, #tpu.memory_space<vmem>>, %arg5: memref<1x128xf32, #tpu.memory_space<vmem>>, %arg6: memref<64x128xf32, #tpu.memory_space<vmem>>) attributes {dimension_semantics = [#tpu.dimension_semantics<parallel>], iteration_bounds = array<i64: 2>, scalar_prefetch = 0 : i64, scratch_operands = 0 : i64, tpu.core_type = #tpu.core_type<tc>, window_params = [{transform_indices = @transform_0, window_bounds = array<i64: 64, 128>}, {pipeline_mode = #tpu.pipeline_mode<synchronous>, transform_indices = @transform_1, window_bounds = array<i64: 128, 256>}, {pipeline_mode = #tpu.pipeline_mode<synchronous>, transform_indices = @transform_2, window_bounds = array<i64: 1, 256>}, {pipeline_mode = #tpu.pipeline_mode<synchronous>, transform_indices = @transform_3, window_bounds = array<i64: 256, 128>}, {pipeline_mode = #tpu.pipeline_mode<synchronous>, transform_indices = @transform_4, window_bounds = array<i64: 1, 128>}, {transform_indices = @transform_5, window_bounds = array<i64: 64, 128>}]} {
    %c0 = arith.constant 0 : index
    %c0_0 = arith.constant 0 : index
    %0 = vector.load %arg1[%c0, %c0_0] : memref<64x128xf32, #tpu.memory_space<vmem>>, vector<64x128xf32>
    %c0_1 = arith.constant 0 : index
    %c0_2 = arith.constant 0 : index
    %1 = vector.load %arg2[%c0_1, %c0_2] : memref<128x256xf32, #tpu.memory_space<vmem>>, vector<128x256xf32>
    %cst = arith.constant dense<0.000000e+00> : vector<64x256xf32>
    %2 = tpu.matmul %0, %1, %cst {dimension_numbers = #tpu.dot_dimension_numbers<[1], [0], [0], [1], [0, 0, 1, 1], [], []>} : vector<64x128xf32>, vector<128x256xf32>, vector<64x256xf32> -> vector<64x256xf32>
    %c0_3 = arith.constant 0 : index
    %c0_4 = arith.constant 0 : index
    %3 = vector.load %arg3[%c0_3, %c0_4] : memref<1x256xf32, #tpu.memory_space<vmem>>, vector<1x256xf32>
    %4 = vector.broadcast %3 : vector<1x256xf32> to vector<64x256xf32>
    %5 = arith.addf %2, %4 : vector<64x256xf32>
    %c0_5 = arith.constant 0 : index
    %c0_6 = arith.constant 0 : index
    %6 = vector.load %arg4[%c0_5, %c0_6] : memref<256x128xf32, #tpu.memory_space<vmem>>, vector<256x128xf32>
    %cst_7 = arith.constant dense<0.000000e+00> : vector<64x128xf32>
    %7 = tpu.matmul %5, %6, %cst_7 {dimension_numbers = #tpu.dot_dimension_numbers<[1], [0], [0], [1], [0, 0, 1, 1], [], []>} : vector<64x256xf32>, vector<256x128xf32>, vector<64x128xf32> -> vector<64x128xf32>
    %c0_8 = arith.constant 0 : index
    %c0_9 = arith.constant 0 : index
    %8 = vector.load %arg5[%c0_8, %c0_9] : memref<1x128xf32, #tpu.memory_space<vmem>>, vector<1x128xf32>
    %9 = vector.broadcast %8 : vector<1x128xf32> to vector<64x128xf32>
    %10 = arith.addf %7, %9 : vector<64x128xf32>
    %11 = arith.addf %10, %0 : vector<64x128xf32>
    %c0_10 = arith.constant 0 : index
    %c0_11 = arith.constant 0 : index
    %12 = vector.load %arg6[%c0_10, %c0_11] : memref<64x128xf32, #tpu.memory_space<vmem>>, vector<64x128xf32>
    tpu.vector_store %arg6[%c0_10, %c0_11], %11 {strides = array<i32>} : memref<64x128xf32, #tpu.memory_space<vmem>>, vector<64x128xf32>,
    return
  }
  func.func @transform_0(%arg0: i32) -> (i32, i32) {
    %c0_i32 = arith.constant 0 : i32
    %c0_i32_0 = arith.constant 0 : i32
    return %arg0, %c0_i32 : i32, i32
  }
  func.func @transform_1(%arg0: i32) -> (i32, i32) {
    %c0_i32 = arith.constant 0 : i32
    %c0_i32_0 = arith.constant 0 : i32
    %c0_i32_1 = arith.constant 0 : i32
    return %c0_i32, %c0_i32_0 : i32, i32
  }
  func.func @transform_2(%arg0: i32) -> (i32, i32) {
    %c0_i32 = arith.constant 0 : i32
    %c0_i32_0 = arith.constant 0 : i32
    %c0_i32_1 = arith.constant 0 : i32
    return %c0_i32, %c0_i32_0 : i32, i32
  }
  func.func @transform_3(%arg0: i32) -> (i32, i32) {
    %c0_i32 = arith.constant 0 : i32
    %c0_i32_0 = arith.constant 0 : i32
    %c0_i32_1 = arith.constant 0 : i32
    return %c0_i32, %c0_i32_0 : i32, i32
  }
  func.func @transform_4(%arg0: i32) -> (i32, i32) {
    %c0_i32 = arith.constant 0 : i32
    %c0_i32_0 = arith.constant 0 : i32
    %c0_i32_1 = arith.constant 0 : i32
    return %c0_i32, %c0_i32_0 : i32, i32
  }
  func.func @transform_5(%arg0: i32) -> (i32, i32) {
    %c0_i32 = arith.constant 0 : i32
    %c0_i32_0 = arith.constant 0 : i32
    return %arg0, %c0_i32 : i32, i32
  }
}

</mosaic_0001>

<bundles_post_ra>
// kernel: tpu_custom_call.1
= control target key start
LH: loop header
LB: loop body
LE: loop exit
PB: predicated region body
PF: predicated region fallthrough
CT: control target
= control target key end

     0   :  { %10 = vsyncpa [#allocation3], 0  ;;  %s1430_s0 = inlined_call_operand.hbm [shape: f32[128,128], index: 0, kind: input, shape index: {}]   ;;  %s1431_s1 = inlined_call_operand.hbm [shape: f32[128,256], index: 1, kind: input, shape index: {}]   ;;  %s1432_s2 = inlined_call_operand.vmem [shape: f32[1,256], index: 2, kind: input, shape index: {}]   ;;  %s1433_s3 = inlined_call_operand.hbm [shape: f32[256,128], index: 3, kind: input, shape index: {}]   ;;  %s1434_s4 = inlined_call_operand.vmem [shape: f32[1,128], index: 4, kind: input, shape index: {}]   ;;  %s1435_s5 = inlined_call_operand.hbm [shape: f32[128,128], index: 5, kind: output, shape index: {}]  }
   0x1   :  { %12 = vsyncpa [#allocation3 + $0x1], 0 }
   0x2   :  { %13 = vsyncpa [#allocation6], 0 }
   0x3   :  { %14 = vsyncpa [#allocation4], 0 }
   0x4   :  { %16 = vsyncpa [#allocation4 + $0x1], 0  ;;  %s1119_s18 = smov 0   ;;  %s1121_s19 = smov 0  }
   0x5   :  { %s1123_s20 = smov 0   ;;  %s1125_s21 = smov 0  }
   0x6 LB: > { %s1140_s22 = sadd.s32 4294967295, %s1076_s21   ;;  %s705_s23 = sadd.s32 4294967294, %s1076_s21   ;;  %s1076_s21 = sphi %s1125_s21, %s1455_s21   ;;  %s1072_s20 = sphi %s1123_s20, %s1454_s20   ;;  %s1068_s19 = sphi %s1121_s19, %s1453_s19   ;;  %s1064_s18 = sphi %s1119_s18, %s1452_s18  }
   0x7   : > { %p42_p0 = scmp.ne.s32.totalorder %s1068_s19, %s1064_s18  ;;  %p1436_p1 = scmp.eq.s32.totalorder %s1140_s22, 0 }
   0x8   : > { %p156_p3 = scmp.eq.s32.totalorder %s705_s23, 1  ;;  %p706_p5 = scmp.ge.s32.totalorder %s1076_s21, 1 }
   0x9   : > { %p1149_p4 = por %p1436_p1, %p42_p0  ;;  %p163_p7 = scmp.lt.s32.totalorder %s1076_s21, 3 }
   0xa   : > { %p1154_p6 = por %p156_p3, %p42_p0  ;;  %s1078_s27 = smov [#allocation5]  }
   0xb   : > { %s1439_s24 = scalar_select %p1149_p4, 1, 0 }
   0xc   : > { %s1440_s25 = scalar_select %p1154_p6, 1, 0 }
   0xd   : > { %p1159_p8 = pnand %p706_p5, %p163_p7  ;;  %s175_s28 = sshll.u32 %s1078_s27, 4  ;;  %s1163_s28 = int_to_ptr.vmem [resolvable:$true] %s175_s28 }
   0xe   : > { %s1079_s30 = smov [#allocation7]   ;;  %s920_s9 = scalar_lea.hbm %s1431_s1, 4096 }
   0xf   : > { %p858_p9 = pneg %p1159_p8  ;;  %s191_s6 = sshll.u32 %s1079_s30, 4  ;;  %s1174_s6 = int_to_ptr.vmem [resolvable:$true] %s191_s6 }
  0x10   : > { %p921_p12 = scmp.ne.s32.totalorder %s1431_s1, %s920_s9  ;;  %p927_p5 = scmp.lt.u32.totalorder %s920_s9, %s1431_s1 }
  0x11   : > { %p1170_p11 = pnand %p858_p9, %p1436_p1 }
  0x13   : > { %p922_p13 = pneg %p1170_p11 }
  0x15   : > { %p923_p0 = pnand %p922_p13, %p921_p12 }
  0x17   : > { %p924_p3 = pneg %p923_p0 }
  0x19   : > { %p929_p7 = pnand %p927_p5, %p924_p3 }
  0x1b   : > { %932 = shalt.err (!%p929_p7)
}
  0x1c   : > { %s933_s14 = scalar_lea.vmem %s1163_s28, 4096  ;;  %p941_p2 = scmp.lt.s32.totalorder %s1163_s28, %s1163_s28 }
  0x1d   : > { %p934_p9 = scmp.ne.s32.totalorder %s1163_s28, %s933_s14  ;;  %p942_p12 = scmp.lt.s32.totalorder %s933_s14, %s933_s14 }
  0x1f   : > { %p936_p10 = pnand %p934_p9, %p922_p13  ;;  %p943_p0 = por %p942_p12, %p941_p2 }
  0x21   : > { %p937_p1 = pneg %p936_p10 }
  0x23   : > { %p944_p6 = pnand %p943_p0, %p937_p1 }
  0x25   : > { %947 = shalt.err (!%p944_p6)
}
  0x26   : > { %s1080_s15 = smov 256   ;;  %s1081_s16 = smov 16  }
  0x27   : > { %861 = dma.hbm_to_vmem [thread:$0]  (!%p1170_p11), %s1431_s1, 4096, %s1163_s28, [#allocation6], %s1080_s15, %s1080_s15, %s1081_s16  }
  0x28   : > { %s948_s7 = scalar_lea.hbm %s1433_s3, 4096 }
  0x29   : > { %p949_p2 = scmp.ne.s32.totalorder %s1433_s3, %s948_s7  ;;  %p955_p10 = scmp.lt.u32.totalorder %s948_s7, %s1433_s3 }
  0x2b   : > { %p951_p1 = pnand %p949_p2, %p922_p13 }
  0x2d   : > { %p952_p6 = pneg %p951_p1 }
  0x2f   : > { %p957_p3 = pnand %p955_p10, %p952_p6 }
  0x31   : > { %960 = shalt.err (!%p957_p3)
}
  0x32   : > { %s961_s28 = scalar_lea.vmem %s1174_s6, 4096  ;;  %p969_p12 = scmp.lt.s32.totalorder %s1174_s6, %s1174_s6 }
  0x33   : > { %p962_p5 = scmp.ne.s32.totalorder %s1174_s6, %s961_s28  ;;  %p970_p0 = scmp.lt.s32.totalorder %s961_s28, %s961_s28 }
  0x35   : > { %p964_p7 = pnand %p962_p5, %p922_p13  ;;  %p971_p2 = por %p970_p0, %p969_p12 }
  0x37   : > { %p965_p9 = pneg %p964_p7 }
  0x39   : > { %p972_p1 = pnand %p971_p2, %p965_p9 }
  0x3b   : > { %975 = shalt.err (!%p972_p1)
}
  0x3c   : > { %s1082_s12 = smov 128   ;;  %s1083_s13 = smov 8  }
  0x3d   : > { %864 = dma.hbm_to_vmem [thread:$0]  (!%p1170_p11), %s1433_s3, 4096, %s1174_s6, [#allocation6], %s1082_s12, %s1082_s12, %s1083_s13  }
  0x3e   : > { %s1232_s16 = sadd.s32 1, %s1076_s21   ;;  %s29_s23 = sadd.s32 1, %s1072_s20 }
  0x3f   : > { %s26_s17 = ssub.s32 %s1076_s21, %s1232_s16  ;;  %p36_p6 = scmp.ne.s32.totalorder %s1072_s20, %s1068_s19 }
  0x40   : > { %p27_p13 = scmp.eq.s32.totalorder %s26_s17, 0  ;;  %p37_p10 = scmp.eq.s32.totalorder %s1076_s21, 0 }
  0x41   : > { %p1443_p5 = scmp.eq.s32.totalorder %s1140_s22, 1  ;;  %p875_p9 = scmp.lt.s32.totalorder %s1076_s21, 2 }
  0x42   : > { %s1241_s27 = scalar_select %p27_p13, %s1072_s20, %s29_s23  }
  0x43   : > { %p38_p3 = por %p37_p10, %p36_p6  ;;  %p1245_p7 = por %p1443_p5, %p36_p6 }
  0x44   : > { %s208_s30 = sand.u32 1, %s1072_s20   ;;  %s724_s6 = sshll.u32 %s1076_s21, 10 }
  0x45   : > { %s1444_s29 = scalar_select %p1245_p7, 1, 0 }
  0x46   : > { %s710_s7 = sshll.u32 %s208_s30, 6  ;;  %s1255_s10 = scalar_lea.hbm %s1430_s0, %s724_s6 }
  0x47   : > { %s212_s11 = scalar_lea.vmem [#allocation2], %s710_s7  ;;  %p1259_p11 = pnand %p875_p9, %p38_p3 }
  0x48   : > { %s219_s28 = sshll.u32 %s212_s11, 4  ;;  %s1263_s15 = scalar_lea.sflag [#allocation3], %s208_s30  ;;  %s1257_s28 = int_to_ptr.vmem [resolvable:$true] %s219_s28 }
  0x49   : > { %s976_s17 = scalar_lea.hbm %s1255_s10, 1024  ;;  %p978_p0 = pneg %p1259_p11 }
  0x4a   : > { %p977_p12 = scmp.ne.s32.totalorder %s1255_s10, %s976_s17  ;;  %s981_s6 = scalar_lea.hbm %s1430_s0, 2048 }
  0x4b   : > { %p982_p13 = scmp.lt.u32.totalorder %s1255_s10, %s1430_s0  ;;  %p983_p6 = scmp.lt.u32.totalorder %s981_s6, %s976_s17 }
  0x4c   : > { %p979_p2 = pnand %p978_p0, %p977_p12  ;;  %p985_p3 = scmp.lt.u32.totalorder %s976_s17, %s1255_s10 }
  0x4d   : > { %p984_p10 = por %p983_p6, %p982_p13 }
  0x4e   : > { %p980_p1 = pneg %p979_p2 }
  0x4f   : > { %p986_p5 = por %p985_p3, %p984_p10 }
  0x51   : > { %p987_p9 = pnand %p986_p5, %p980_p1 }
  0x53   : > { %990 = shalt.err (!%p987_p9)
}
  0x54   : > { %s991_s30 = scalar_lea.vmem %s1257_s28, 1024  ;;  %s1084_s11 = smov [#allocation2]  }
  0x55   : > { %p992_p12 = scmp.ne.s32.totalorder %s1257_s28, %s991_s30  ;;  %s996_s23 = sshll.u32 %s1084_s11, 4  ;;  %s997_s23 = int_to_ptr.vmem [resolvable:$false] %s996_s23 }
  0x56   : > { %s998_s7 = scalar_lea.vmem %s997_s23, 2048  ;;  %p999_p4 = scmp.lt.s32.totalorder %s1257_s28, %s997_s23 }
  0x57   : > { %p994_p2 = pnand %p992_p12, %p978_p0  ;;  %p1000_p13 = scmp.lt.s32.totalorder %s998_s7, %s991_s30 }
  0x59   : > { %p995_p7 = pneg %p994_p2  ;;  %p1001_p6 = por %p1000_p13, %p999_p4 }
  0x5b   : > { %p1002_p10 = pnand %p1001_p6, %p995_p7 }
  0x5d   : > { %1005 = shalt.err (!%p1002_p10)
}
  0x5e   : > { %868 = dma.hbm_to_vmem [thread:$0]  (!%p1259_p11), %s1255_s10, 1024, %s1257_s28, %s1263_s15, %s1082_s12, %s1082_s12, %s1083_s13  }
  0x5f   : > { %231 = sbr.rel (%p1159_p8) target bundleno = 619 (0x26b), region = 40  ;;  %s1297_s17 = sand.u32 (!%p1159_p8), 1, %s1068_s19  }
  0x60   : > { %s714_s6 = sshll.u32 (!%p1159_p8), %s1297_s17, 6  ;;  %s234_s8 = scalar_lea.sflag (!%p1159_p8), [#allocation3], %s1297_s17 }
  0x61   : > { %s1303_s14 = scalar_lea.vmem (!%p1159_p8), [#allocation2], %s714_s6  ;;  %p1446_p4 = scmp.ne.s32.totalorder (!%p1159_p8), %s1439_s24, 0 }
  0x66   : > { %1051 = dma.done.wait (%p1446_p4), %s234_s8, 1024  }
  0x67   : > { %1053 = vsyncadd (%p1446_p4), %s234_s8, 4294966272  ;;  %p1447_p7 = scmp.eq.s32.totalorder %s1140_s22, 0 }
  0x69   : > { %1055 = dma.done.wait (%p1447_p7), [#allocation6], 8192   ;;  %p1448_p8 = pmov %p1447_p7 }
  0x6a   : > { %v1085_v0 = vmov 0.0   ;;  %v283_v1 = vld [vmem:[#allocation5 + $0x8] sm:$0xff]  ;;  %v285_v2 = vld [vmem:[#allocation5 + $0x18] sm:$0xff]  ;;  %v282_v3 = vld [vmem:[#allocation5] sm:$0xff]  ;;  %s1362_s10 = scalar_lea.vmem [#allocation8], %s714_s6  ;;  %s725_s28 = sshll.u32 %s1140_s22, 10 }
  0x6b   : > { %1057 = vsyncadd (%p1448_p8), [#allocation6], 4294959104  ;;  %390 = vmatprep.mubr.f32.mxu0 %v1085_v0  ;;  %v782_v4 = vpack.c.bf16 %v285_v2, %v283_v1  ;;  %v284_v5 = vld [vmem:[#allocation5 + $0x10] sm:$0xff]  ;;  %v287_v6 = vld [vmem:[#allocation5 + $0x28] sm:$0xff]  ;;  %s613_s15 = sshll.u32 %s1362_s10, 4  ;;  %s1382_s11 = scalar_lea.hbm %s1435_s5, %s725_s28  ;;  %s1384_s15 = int_to_ptr.vmem [resolvable:$true] %s613_s15 }
  0x6c   : > { %v289_v7 = vld [vmem:[#allocation5 + $0x38] sm:$0xff]  ;;  %v784_v8 = vpack.c.bf16 %v284_v5, %v282_v3  ;;  %v286_v10 = vld [vmem:[#allocation5 + $0x20] sm:$0xff]  ;;  %v288_v11 = vld [vmem:[#allocation5 + $0x30] sm:$0xff]  ;;  %s600_s23 = scalar_lea.sflag [#allocation4], %s1297_s17  ;;  %s1006_s7 = scalar_lea.vmem %s1384_s15, 1024 }
  0x6d   : > { %v786_v9 = vpack.c.bf16 %v289_v7, %v287_v6  ;;  %v291_v12 = vld [vmem:[#allocation5 + $0x48] sm:$0xff]  ;;  %783 = vmatprep.subr.bf16.mxu0 %v782_v4  ;;  %v293_v13 = vld [vmem:[#allocation5 + $0x58] sm:$0xff]  ;;  %v788_v14 = vpack.c.bf16 %v288_v11, %v286_v10  ;;  %v290_v16 = vld [vmem:[#allocation5 + $0x40] sm:$0xff]  ;;  %p1007_p11 = scmp.ne.s32.totalorder %s1384_s15, %s1006_s7  ;;  %p1449_p0 = scmp.ne.s32.totalorder %s1444_s29, 0 }
  0x6e   : > { %785 = vmatpush1.bf16.msra.mxu0 %v784_v8  ;;  %v790_v15 = vpack.c.bf16 %v293_v13, %v291_v12  ;;  %v292_v17 = vld [vmem:[#allocation5 + $0x50] sm:$0xff]  ;;  %v295_v18 = vld [vmem:[#allocation5 + $0x68] sm:$0xff]  ;;  %v297_v19 = vld [vmem:[#allocation5 + $0x78] sm:$0xff]  ;;  %s1086_s22 = smov [#allocation8]  }
  0x6f   : > { %787 = vmatprep.subr.bf16.mxu0 %v786_v9  ;;  %v792_v20 = vpack.c.bf16 %v292_v17, %v290_v16  ;;  %v794_v21 = vpack.c.bf16 %v297_v19, %v295_v18  ;;  %v294_v22 = vld [vmem:[#allocation5 + $0x60] sm:$0xff]  ;;  %v296_v23 = vld [vmem:[#allocation5 + $0x70] sm:$0xff]  ;;  %v299_v24 = vld [vmem:[#allocation5 + $0x88] sm:$0xff]  ;;  %p1008_p1 = pnand %p1007_p11, %p1449_p0  ;;  %s1010_s6 = sshll.u32 %s1086_s22, 4  ;;  %s1011_s6 = int_to_ptr.vmem [resolvable:$false] %s1010_s6 }
  0x70   : > { %v301_v25 = vld [vmem:[#allocation5 + $0x98] sm:$0xff]  ;;  %v796_v26 = vpack.c.bf16 %v296_v23, %v294_v22  ;;  %v298_v27 = vld [vmem:[#allocation5 + $0x80] sm:$0xff]  ;;  %v300_v28 = vld [vmem:[#allocation5 + $0x90] sm:$0xff]  ;;  %s1012_s8 = scalar_lea.vmem %s1011_s6, 2048  ;;  %p1013_p5 = scmp.lt.s32.totalorder %s1384_s15, %s1011_s6 }
  0x71   : > { %v303_v29 = vld [vmem:[#allocation5 + $0xa8] sm:$0xff]  ;;  %v798_v30 = vpack.c.bf16 %v301_v25, %v299_v24  ;;  %v305_v31 = vld [vmem:[#allocation5 + $0xb8] sm:$0xff]  ;;  %v455_v32 = vld [vmem:[#allocation7 + $0x80] sm:$0xff]  ;;  %v800_v42 = vpack.c.bf16 %v300_v28, %v298_v27  ;;  %p1009_p3 = pneg %p1008_p1  ;;  %p1014_p9 = scmp.lt.s32.totalorder %s1012_s8, %s1006_s7 }
  0x72   : > { %789 = vmatpush1.bf16.msra.mxu0 %v788_v14  ;;  %v456_v33 = vld [vmem:[#allocation7 + $0x88] sm:$0xff]  ;;  %v439_v35 = vld [vmem:[#allocation7] sm:$0xff]  ;;  %v457_v37 = vld [vmem:[#allocation7 + $0x90] sm:$0xff]  ;;  %v802_v46 = vpack.c.bf16 %v305_v31, %v303_v29 }
  0x73   : > { %791 = vmatprep.subr.bf16.mxu0 %v790_v15  ;;  %v814_v34 = vpack.c.bf16 %v456_v33, %v455_v32  ;;  %v440_v36 = vld [vmem:[#allocation7 + $0x8] sm:$0xff]  ;;  %v458_v39 = vld [vmem:[#allocation7 + $0x98] sm:$0xff]  ;;  %v441_v40 = vld [vmem:[#allocation7 + $0x10] sm:$0xff]  ;;  %p1015_p12 = por %p1014_p9, %p1013_p5 }
  0x74   : > { %v816_v38 = vpack.c.bf16 %v440_v36, %v439_v35  ;;  %v442_v41 = vld [vmem:[#allocation7 + $0x18] sm:$0xff]  ;;  %v818_v43 = vpack.c.bf16 %v458_v39, %v457_v37  ;;  %v459_v44 = vld [vmem:[#allocation7 + $0xa0] sm:$0xff]  ;;  %v460_v45 = vld [vmem:[#allocation7 + $0xa8] sm:$0xff] }
  0x75   : > { %815 = vmatprep.subr.bf16.mxu1 %v814_v34  ;;  %v302_v47 = vld [vmem:[#allocation5 + $0xa0] sm:$0xff]  ;;  %v304_v48 = vld [vmem:[#allocation5 + $0xb0] sm:$0xff]  ;;  %v307_v49 = vld [vmem:[#allocation5 + $0xc8] sm:$0xff]  ;;  %v820_v50 = vpack.c.bf16 %v442_v41, %v441_v40  ;;  %v822_v52 = vpack.c.bf16 %v460_v45, %v459_v44  ;;  %p1016_p2 = pnand %p1015_p12, %p1009_p3 }
  0x76   : > { %793 = vmatpush1.bf16.msra.mxu0 %v792_v20  ;;  %817 = vmatpush3.bf16.msra.mxu1 %v816_v38  ;;  %v309_v51 = vld [vmem:[#allocation5 + $0xd8] sm:$0xff]  ;;  %v443_v53 = vld [vmem:[#allocation7 + $0x20] sm:$0xff]  ;;  %v444_v54 = vld [vmem:[#allocation7 + $0x28] sm:$0xff]  ;;  %v804_v57 = vpack.c.bf16 %v304_v48, %v302_v47 }
  0x77   : > { %795 = vmatprep.subr.bf16.mxu0 %v794_v21  ;;  %819 = vmatprep.subr.bf16.mxu1 %v818_v43  ;;  %v461_v55 = vld [vmem:[#allocation7 + $0xb0] sm:$0xff]  ;;  %v462_v56 = vld [vmem:[#allocation7 + $0xb8] sm:$0xff]  ;;  %v806_v58 = vpack.c.bf16 %v309_v51, %v307_v49  ;;  %v306_v59 = vld [vmem:[#allocation5 + $0xc0] sm:$0xff]  ;;  %v824_v62 = vpack.c.bf16 %v444_v54, %v443_v53 }
  0x78   : > { %v308_v60 = vld [vmem:[#allocation5 + $0xd0] sm:$0xff]  ;;  %v311_v61 = vld [vmem:[#allocation5 + $0xe8] sm:$0xff]  ;;  %v313_v63 = vld [vmem:[#allocation5 + $0xf8] sm:$0xff]  ;;  %v826_v1 = vpack.c.bf16 %v462_v56, %v461_v55 }
  0x79   : > { %v445_v2 = vld [vmem:[#allocation7 + $0x30] sm:$0xff]  ;;  %v446_v3 = vld [vmem:[#allocation7 + $0x38] sm:$0xff]  ;;  %v463_v4 = vld [vmem:[#allocation7 + $0xc0] sm:$0xff]  ;;  %v808_v6 = vpack.c.bf16 %v308_v60, %v306_v59  ;;  %v810_v7 = vpack.c.bf16 %v313_v63, %v311_v61 }
  0x7a   : > { %797 = vmatpush1.bf16.msra.mxu0 %v796_v26  ;;  %821 = vmatpush3.bf16.msra.mxu1 %v820_v50  ;;  %v464_v5 = vld [vmem:[#allocation7 + $0xc8] sm:$0xff]  ;;  %v310_v8 = vld [vmem:[#allocation5 + $0xe0] sm:$0xff]  ;;  %v312_v9 = vld [vmem:[#allocation5 + $0xf0] sm:$0xff]  ;;  %v828_v10 = vpack.c.bf16 %v446_v3, %v445_v2 }
  0x7b   : > { %799 = vmatprep.subr.bf16.mxu0 %v798_v30  ;;  %823 = vmatprep.subr.bf16.mxu1 %v822_v52  ;;  %v830_v11 = vpack.c.bf16 %v464_v5, %v463_v4  ;;  %v447_v12 = vld [vmem:[#allocation7 + $0x40] sm:$0xff]  ;;  %v448_v13 = vld [vmem:[#allocation7 + $0x48] sm:$0xff]  ;;  %v465_v14 = vld [vmem:[#allocation7 + $0xd0] sm:$0xff]  ;;  %v812_v16 = vpack.c.bf16 %v312_v9, %v310_v8 }
  0x7c   : > { %v466_v15 = vld [vmem:[#allocation7 + $0xd8] sm:$0xff]  ;;  %v832_v17 = vpack.c.bf16 %v448_v13, %v447_v12  ;;  %v449_v19 = vld [vmem:[#allocation7 + $0x50] sm:$0xff]  ;;  %v467_v21 = vld [vmem:[#allocation7 + $0xe0] sm:$0xff] }
  0x7d   : > { %v834_v18 = vpack.c.bf16 %v466_v15, %v465_v14  ;;  %v450_v20 = vld [vmem:[#allocation7 + $0x58] sm:$0xff]  ;;  %v468_v22 = vld [vmem:[#allocation7 + $0xe8] sm:$0xff]  ;;  %v1315_v23 = vld [vmem:[%s1303_s14] sm:$0xff] }
  0x7e   : > { %801 = vmatpush1.bf16.msra.mxu0 %v800_v42  ;;  %825 = vmatpush3.bf16.msra.mxu1 %v824_v62  ;;  %v836_v24 = vpack.c.bf16 %v450_v20, %v449_v19  ;;  %v838_v25 = vpack.c.bf16 %v468_v22, %v467_v21  ;;  %v451_v26 = vld [vmem:[#allocation7 + $0x60] sm:$0xff]  ;;  %v452_v27 = vld [vmem:[#allocation7 + $0x68] sm:$0xff]  ;;  %v1325_v30 = vld [vmem:[%s1303_s14 + $0x10] sm:$0xff]  ;;  %v316_v42 = vlaneseq }
  0x7f   : > { %803 = vmatprep.subr.bf16.mxu0 %v802_v46  ;;  %827 = vmatprep.subr.bf16.mxu1 %v826_v1  ;;  %v1320_v28 = vld [vmem:[%s1303_s14 + $0x8] sm:$0xff]  ;;  %v840_v29 = vpack.c.bf16 %v452_v27, %v451_v26  ;;  %v1330_v31 = vld [vmem:[%s1303_s14 + $0x18] sm:$0xff]  ;;  %v1335_v32 = vld [vmem:[%s1303_s14 + $0x20] sm:$0xff] }
  0x80   : > { %v1340_v33 = vld [vmem:[%s1303_s14 + $0x28] sm:$0xff]  ;;  %v1345_v34 = vld [vmem:[%s1303_s14 + $0x30] sm:$0xff]  ;;  %v1350_v35 = vld [vmem:[%s1303_s14 + $0x38] sm:$0xff]  ;;  %v317_v43 = vshrl.u32 %v316_v42, 7 }
  0x81   : > { %v469_v36 = vld [vmem:[#allocation7 + $0xf0] sm:$0xff]  ;;  %v470_v37 = vld [vmem:[#allocation7 + $0xf8] sm:$0xff]  ;;  %v314_v45 = vld [vmem:[%s1432_s2] sm:$0x3] }
  0x82   : > { %805 = vmatpush1.bf16.msra.mxu0 %v804_v57  ;;  %829 = vmatpush3.bf16.msra.mxu1 %v828_v10  ;;  %v842_v38 = vpack.c.bf16 %v470_v37, %v469_v36  ;;  %v453_v39 = vld [vmem:[#allocation7 + $0x70] sm:$0xff]  ;;  %v454_v40 = vld [vmem:[#allocation7 + $0x78] sm:$0xff]  ;;  %v322_v44 = vsub.s32 1, %v317_v43 }
  0x83   : > { %807 = vmatprep.subr.bf16.mxu0 %v806_v58  ;;  %831 = vmatprep.subr.bf16.mxu1 %v830_v11  ;;  %v844_v41 = vpack.c.bf16 %v454_v40, %v453_v39 }
  0x84   : > { %v323_v46 = vrot.slane %v314_v45, %v322_v44 }
  0x86   : > { %809 = vmatpush1.bf16.msra.mxu0 %v808_v6  ;;  %833 = vmatpush3.bf16.msra.mxu1 %v832_v17 }
  0x87   : > { %811 = vmatprep.subr.bf16.mxu0 %v810_v7  ;;  %835 = vmatprep.subr.bf16.mxu1 %v834_v18  ;;  %v718_v18 = vld [vmem:[%s1434_s4] ss:$0 sm:$0xff] }
  0x8a   : > { %813 = vmatpush1.bf16.msra.mxu0 %v812_v16  ;;  %837 = vmatpush3.bf16.msra.mxu1 %v836_v24 }
  0x8b   : > { %839 = vmatprep.subr.bf16.mxu1 %v838_v25 }
  0x8d   : > { %391 = vmatmul.mubr.f32.vlgmr.msra.gmra.mrb[0].mxu0 %v1315_v23 }
  0x8e   : > { %396 = vmatprep.mubr.f32.mxu0 %v1085_v0  ;;  %841 = vmatpush3.bf16.msra.mxu1 %v840_v29 }
  0x8f   : > { %843 = vmatprep.subr.bf16.mxu1 %v842_v38 }
  0x91   : > { %397 = vmatmul.mubr.f32.gmra.mrb[2].mxu0 %v1320_v28 }
  0x92   : > { %402 = vmatprep.mubr.f32.mxu0 %v1085_v0  ;;  %845 = vmatpush3.bf16.msra.mxu1 %v844_v41 }
  0x95   : > { %403 = vmatmul.mubr.f32.gmra.mrb[4].mxu0 %v1325_v30 }
  0x96   : > { %408 = vmatprep.mubr.f32.mxu0 %v1085_v0 }
  0x99   : > { %409 = vmatmul.mubr.f32.gmra.mrb[6].mxu0 %v1330_v31 }
  0x9a   : > { %414 = vmatprep.mubr.f32.mxu0 %v1085_v0 }
  0x9d   : > { %415 = vmatmul.mubr.f32.gmra.mrb[8].mxu0 %v1335_v32 }
  0x9e   : > { %420 = vmatprep.mubr.f32.mxu0 %v1085_v0 }
  0xa1   : > { %421 = vmatmul.mubr.f32.gmra.mrb[10].mxu0 %v1340_v33 }
  0xa2   : > { %426 = vmatprep.mubr.f32.mxu0 %v1085_v0 }
  0xa5   : > { %427 = vmatmul.mubr.f32.gmra.mrb[12].mxu0 %v1345_v34 }
  0xa6   : > { %432 = vmatprep.mubr.f32.mxu0 %v1085_v0  ;;  %v318_v0 = vsub.s32 0, %v317_v43 }
  0xa8   : > { %v319_v47 = vrot.slane %v314_v45, %v318_v0 }
  0xa9   : > { %433 = vmatmul.mubr.f32.gmra.mrb[14].mxu0 %v1350_v35 }
 0x160   : > { %v392_v48 = vpop.f32.mrb[0].mxu0 }
 0x161   : > { %v394_v49 = vpop.f32.mrb[1].mxu0  ;;  %v393_v51 = vadd.f32 %v392_v48, %v319_v47 }
 0x162   : > { %v395_v50 = vadd.f32 %v394_v49, %v323_v46 }
 0x164   : > { %v398_v52 = vpop.f32.mrb[2].mxu0  ;;  %542 = vmatprep.mubr.f32.mxu1 %v395_v50 }
 0x165   : > { %v400_v53 = vpop.f32.mrb[3].mxu0  ;;  %543 = vmatmul.mubr.f32.vlgmr.msra.gmra.mrb[0].mxu1 %v393_v51  ;;  %v399_v55 = vadd.f32 %v398_v52, %v319_v47 }
 0x166   : > { %v401_v54 = vadd.f32 %v400_v53, %v323_v46 }
 0x168   : > { %v404_v56 = vpop.f32.mrb[4].mxu0  ;;  %547 = vmatprep.mubr.f32.mxu1 %v401_v54 }
 0x169   : > { %v406_v57 = vpop.f32.mrb[5].mxu0  ;;  %548 = vmatmul.mubr.f32.gmra.mrb[2].mxu1 %v399_v55  ;;  %v405_v59 = vadd.f32 %v404_v56, %v319_v47 }
 0x16a   : > { %v407_v58 = vadd.f32 %v406_v57, %v323_v46 }
 0x16c   : > { %v410_v60 = vpop.f32.mrb[6].mxu0  ;;  %552 = vmatprep.mubr.f32.mxu1 %v407_v58 }
 0x16d   : > { %v412_v61 = vpop.f32.mrb[7].mxu0  ;;  %553 = vmatmul.mubr.f32.gmra.mrb[4].mxu1 %v405_v59  ;;  %v411_v63 = vadd.f32 %v410_v60, %v319_v47 }
 0x16e   : > { %v413_v62 = vadd.f32 %v412_v61, %v323_v46 }
 0x170   : > { %v416_v1 = vpop.f32.mrb[8].mxu0  ;;  %557 = vmatprep.mubr.f32.mxu1 %v413_v62 }
 0x171   : > { %v418_v2 = vpop.f32.mrb[9].mxu0  ;;  %558 = vmatmul.mubr.f32.gmra.mrb[6].mxu1 %v411_v63  ;;  %v417_v4 = vadd.f32 %v416_v1, %v319_v47 }
 0x172   : > { %v419_v3 = vadd.f32 %v418_v2, %v323_v46 }
 0x174   : > { %v422_v5 = vpop.f32.mrb[10].mxu0  ;;  %562 = vmatprep.mubr.f32.mxu1 %v419_v3 }
 0x175   : > { %v424_v6 = vpop.f32.mrb[11].mxu0  ;;  %563 = vmatmul.mubr.f32.gmra.mrb[8].mxu1 %v417_v4  ;;  %v423_v8 = vadd.f32 %v422_v5, %v319_v47 }
 0x176   : > { %v425_v7 = vadd.f32 %v424_v6, %v323_v46 }
 0x178   : > { %v428_v9 = vpop.f32.mrb[12].mxu0  ;;  %567 = vmatprep.mubr.f32.mxu1 %v425_v7 }
 0x179   : > { %v430_v10 = vpop.f32.mrb[13].mxu0  ;;  %568 = vmatmul.mubr.f32.gmra.mrb[10].mxu1 %v423_v8  ;;  %v429_v12 = vadd.f32 %v428_v9, %v319_v47 }
 0x17a   : > { %v431_v11 = vadd.f32 %v430_v10, %v323_v46 }
 0x17c   : > { %v434_v13 = vpop.f32.mrb[14].mxu0  ;;  %572 = vmatprep.mubr.f32.mxu1 %v431_v11 }
 0x17d   : > { %v436_v14 = vpop.f32.mrb[15].mxu0  ;;  %573 = vmatmul.mubr.f32.gmra.mrb[12].mxu1 %v429_v12  ;;  %v435_v16 = vadd.f32 %v434_v13, %v319_v47 }
 0x17e   : > { %v437_v15 = vadd.f32 %v436_v14, %v323_v46 }
 0x180   : > { %577 = vmatprep.mubr.f32.mxu1 %v437_v15 }
 0x181   : > { %578 = vmatmul.mubr.f32.gmra.mrb[14].mxu1 %v435_v16 }
 0x238   : > { %v758_v17 = vpop.f32.mrb[0].mxu1 }
 0x239   : > { %v759_v19 = vpop.f32.mrb[1].mxu1 }
 0x23a   : > { %v760_v20 = vadd.f32 %v759_v19, %v758_v17 }
 0x23c   : > { %v545_v21 = vadd.f32 %v760_v20, %v718_v18  ;;  %v761_v22 = vpop.f32.mrb[2].mxu1 }
 0x23d   : > { %v762_v24 = vpop.f32.mrb[3].mxu1 }
 0x23e   : > { %v583_v25 = vadd.f32 %v545_v21, %v1315_v23  ;;  %v763_v26 = vadd.f32 %v762_v24, %v761_v22 }
 0x240   : > { %591 = vst [vmem:[%s1362_s10] sm:$0xff] %v583_v25  ;;  %v550_v27 = vadd.f32 %v763_v26, %v718_v18  ;;  %v764_v29 = vpop.f32.mrb[4].mxu1 }
 0x241   : > { %v765_v36 = vpop.f32.mrb[5].mxu1 }
 0x242   : > { %v584_v37 = vadd.f32 %v550_v27, %v1320_v28  ;;  %v766_v38 = vadd.f32 %v765_v36, %v764_v29 }
 0x244   : > { %592 = vst [vmem:[%s1362_s10 + $0x8] sm:$0xff] %v584_v37  ;;  %v555_v39 = vadd.f32 %v766_v38, %v718_v18  ;;  %v767_v40 = vpop.f32.mrb[6].mxu1 }
 0x245   : > { %v768_v23 = vpop.f32.mrb[7].mxu1 }
 0x246   : > { %v585_v41 = vadd.f32 %v555_v39, %v1325_v30  ;;  %v769_v42 = vadd.f32 %v768_v23, %v767_v40 }
 0x248   : > { %593 = vst [vmem:[%s1362_s10 + $0x10] sm:$0xff] %v585_v41  ;;  %v560_v43 = vadd.f32 %v769_v42, %v718_v18  ;;  %v770_v44 = vpop.f32.mrb[8].mxu1 }
 0x249   : > { %v771_v45 = vpop.f32.mrb[9].mxu1 }
 0x24a   : > { %v586_v0 = vadd.f32 %v560_v43, %v1330_v31  ;;  %v772_v46 = vadd.f32 %v771_v45, %v770_v44 }
 0x24c   : > { %594 = vst [vmem:[%s1362_s10 + $0x18] sm:$0xff] %v586_v0  ;;  %v565_v47 = vadd.f32 %v772_v46, %v718_v18  ;;  %v773_v28 = vpop.f32.mrb[10].mxu1 }
 0x24d   : > { %v774_v48 = vpop.f32.mrb[11].mxu1 }
 0x24e   : > { %v587_v49 = vadd.f32 %v565_v47, %v1335_v32  ;;  %v775_v50 = vadd.f32 %v774_v48, %v773_v28 }
 0x250   : > { %595 = vst [vmem:[%s1362_s10 + $0x20] sm:$0xff] %v587_v49  ;;  %v570_v30 = vadd.f32 %v775_v50, %v718_v18  ;;  %v776_v51 = vpop.f32.mrb[12].mxu1 }
 0x251   : > { %v777_v52 = vpop.f32.mrb[13].mxu1 }
 0x252   : > { %v588_v53 = vadd.f32 %v570_v30, %v1340_v33  ;;  %v778_v31 = vadd.f32 %v777_v52, %v776_v51 }
 0x254   : > { %596 = vst [vmem:[%s1362_s10 + $0x28] sm:$0xff] %v588_v53  ;;  %v575_v54 = vadd.f32 %v778_v31, %v718_v18  ;;  %v779_v55 = vpop.f32.mrb[14].mxu1 }
 0x255   : > { %v780_v56 = vpop.f32.mrb[15].mxu1 }
 0x256   : > { %v589_v57 = vadd.f32 %v575_v54, %v1345_v34  ;;  %v781_v58 = vadd.f32 %v780_v56, %v779_v55 }
 0x258   : > { %597 = vst [vmem:[%s1362_s10 + $0x30] sm:$0xff] %v589_v57  ;;  %v580_v32 = vadd.f32 %v781_v58, %v718_v18 }
 0x25a   : > { %v590_v33 = vadd.f32 %v580_v32, %v1350_v35 }
 0x25c   : > { %598 = vst [vmem:[%s1362_s10 + $0x38] sm:$0xff] %v590_v33 }
 0x25d   : > { %1019 = shalt.err (!%p1016_p2)
}
 0x25e   : > { %s1020_s14 = scalar_lea.hbm %s1382_s11, 1024  ;;  %s1024_s12 = scalar_lea.hbm %s1435_s5, 2048 }
 0x25f   : > { %p1021_p13 = scmp.ne.s32.totalorder %s1382_s11, %s1020_s14  ;;  %p1025_p4 = scmp.lt.u32.totalorder %s1382_s11, %s1435_s5 }
 0x260   : > { %p1026_p7 = scmp.lt.u32.totalorder %s1024_s12, %s1020_s14  ;;  %p1028_p11 = scmp.lt.u32.totalorder %s1020_s14, %s1382_s11 }
 0x261   : > { %p1022_p6 = pnand %p1021_p13, %p1449_p0 }
 0x262   : > { %p1027_p8 = por %p1026_p7, %p1025_p4 }
 0x263   : > { %p1023_p10 = pneg %p1022_p6 }
 0x264   : > { %p1029_p1 = por %p1028_p11, %p1027_p8 }
 0x266   : > { %p1030_p3 = pnand %p1029_p1, %p1023_p10 }
 0x268   : > { %1033 = shalt.err (!%p1030_p3)
}
 0x269   : > { %s1087_s28 = smov 128   ;;  %s1088_s9 = smov 8  }
 0x26a   : > { %856 = dma.vmem_to_hbm [thread:$0]  (%p1449_p0), %s1384_s15, 1024, %s1382_s11, %s600_s23, %s1087_s28, %s1087_s28, %s1088_s9  }
 0x26b PF: > { %s628_s30 = sand.u32 1, %s1064_s18   ;;  %p1450_p5 = scmp.ne.s32.totalorder %s1440_s25, 0 }
 0x26c   : > { %p1451_p9 = scmp.ge.s32.totalorder %s1076_s21, 2  ;;  %s629_s7 = scalar_lea.sflag [#allocation4], %s628_s30 }
 0x26e   : > { %p870_p12 = pnand %p1451_p9, %p1450_p5 }
 0x270   : > { %1059 = dma.done.wait (!%p870_p12), %s629_s7, 1024  }
 0x271   : > { %1061 = vsyncadd (!%p870_p12), %s629_s7, 4294966272  ;;  %p19_p2 = scmp.ge.s32.totalorder %s1232_s16, 4   ;;  %s1452_s18 = smov %s1068_s19 }
 0x272   : > { %s1453_s19 = smov %s1072_s20  ;;  %s1454_s20 = smov %s1241_s27 }
 0x273   : > { %s1455_s21 = smov %s1232_s16  ;;  %21 = sbr.rel (!%p19_p2) target bundleno = 6 (0x6), region = 93 }
 0x27a   :  { %634 = vsyncpa [#allocation3], 1 }
 0x27b   :  { %636 = vsyncpa [#allocation3 + $0x1], 1 }
 0x27c   :  { %637 = vsyncpa [#allocation6], 1 }
 0x27d   :  { %638 = vsyncpa [#allocation4], 1 }
 0x27e   :  { %640 = vsyncpa [#allocation4 + $0x1], 1 }

</bundles_post_ra>
